<compile_context>
chip_gen: v6e
topology: v6e:2x2x1
jax: 0.10.0
libtpu: 0.0.40
codegen_flags: <defaults>
</compile_context>

<pallas_src>
import jax
import jax.numpy as jnp
from jax.experimental import pallas as pl
from jax.experimental.pallas import tpu as pltpu

INPUT_SIZE = 100
LATENT_SIZE = 10
HIDDEN = 256
OUT = LATENT_SIZE * 2      # 20


def _round_up(n, m):
    return (n + m - 1) // m * m


def encoder_kernel(x_ref, w1_ref, b1_ref, w2_ref, b2_ref, o_ref):
    # Hoist bias reads once per grid step.
    b1 = b1_ref[...]                        # (1, 256) f32
    b2 = b2_ref[...]                        # (1, 20)  f32

    # fc1 + ReLU: (tb, 100) @ (100, 256).  K=100 is lane-padded by Mosaic in
    # VMEM; f32 accumulation on the MXU, bias-add/ReLU in f32 on the VPU.
    h = jnp.dot(x_ref[...], w1_ref[...], preferred_element_type=jnp.float32)
    h = jnp.maximum(h + b1, 0.0)

    # fc2: (tb, 256) @ (256, 20).  Narrow output -> masked stores, but only
    # 80 B/row of HBM writeback (the dominant saving for this mem-bound MLP).
    y = jnp.dot(h.astype(w2_ref.dtype), w2_ref[...],
                preferred_element_type=jnp.float32)
    o_ref[...] = (y + b2).astype(o_ref.dtype)


def encoder_forward(x, w1, b1, w2, b2, *, block_b=2048,
                    compute_dtype=jnp.bfloat16):
    """VAE encoder forward: relu(x @ w1 + b1) @ w2 + b2.

    x: (B, 100), w1: (100, 256), b1: (1, 256), w2: (256, 20), b2: (1, 20).
    Returns (B, 20) in x's original dtype.  compute_dtype (default bf16, good
    on v5e/v6e/v7x alike) only affects the matmul operands; accumulation and
    the bias/ReLU path stay f32.  Pass compute_dtype=None for a pure-f32 run.
    """
    B, K = x.shape
    H = w1.shape[1]
    N = w2.shape[1]
    out_dtype = x.dtype

    # Cast matmul operands (no-op if already in compute_dtype -- pre-cast the
    # weights once outside any hot loop to avoid per-call converts).
    if compute_dtype is not None:
        if x.dtype != compute_dtype:
            x = x.astype(compute_dtype)
        if w1.dtype != compute_dtype:
            w1 = w1.astype(compute_dtype)
        if w2.dtype != compute_dtype:
            w2 = w2.astype(compute_dtype)
    if b1.dtype != jnp.float32:
        b1 = b1.astype(jnp.float32)
    if b2.dtype != jnp.float32:
        b2 = b2.astype(jnp.float32)

    # Batch tile: large enough to amortize per-step overhead, capped at
    # ceil(B/2) so big batches always give >=2 grid steps (v7x megacore).
    row_align = 16
    tb = min(_round_up(block_b, row_align),
             max(row_align, _round_up(pl.cdiv(B, 2), row_align)))
    grid = (pl.cdiv(B, tb),)

    param_bytes = sum(int(a.size) * a.dtype.itemsize for a in (w1, b1, w2, b2))
    act_bytes = B * (K * x.dtype.itemsize + N * out_dtype.itemsize)
    cost = pl.CostEstimate(
        flops=2 * B * (K * H + H * N),
        transcendentals=0,
        bytes_accessed=act_bytes + param_bytes,
    )

    # Double-buffered x / out blocks + (conservatively double-counted) resident
    # weights.  Only raise the scoped-VMEM limit when the default would not fit.
    vmem_needed = (2 * tb * (K * x.dtype.itemsize + N * out_dtype.itemsize)
                   + 2 * param_bytes + (2 << 20))
    vmem_limit = int(vmem_needed) if vmem_needed > (32 << 20) else None

    return pl.pallas_call(
        encoder_kernel,
        out_shape=jax.ShapeDtypeStruct((B, N), out_dtype),
        grid_spec=pltpu.PrefetchScalarGridSpec(
            num_scalar_prefetch=0,
            grid=grid,
            in_specs=[
                pl.BlockSpec((tb, K), lambda i: (i, 0)),   # x: streamed blocks
                pl.BlockSpec((K, H), lambda i: (0, 0)),    # w1: VMEM-resident
                pl.BlockSpec((1, H), lambda i: (0, 0)),    # b1: VMEM-resident
                pl.BlockSpec((H, N), lambda i: (0, 0)),    # w2: VMEM-resident
                pl.BlockSpec((1, N), lambda i: (0, 0)),    # b2: VMEM-resident
            ],
            out_specs=pl.BlockSpec((tb, N), lambda i: (i, 0)),
        ),
        compiler_params=pltpu.CompilerParams(
            # Batch axis is independent -> shards across both TCs on v7x;
            # harmless on v5e/v6e.
            dimension_semantics=("parallel",),
            vmem_limit_bytes=vmem_limit,
        ),
        cost_estimate=cost,
    )(x, w1, b1, w2, b2)


def init_params(key):
    """Deterministic init mirroring nn.Linear shapes (weights pre-transposed
    to (in_features, out_features) so the kernel computes x @ W + b)."""
    k1, k2, k3, k4 = jax.random.split(key, 4)
    lim1 = 1.0 / jnp.sqrt(INPUT_SIZE)
    lim2 = 1.0 / jnp.sqrt(HIDDEN)
    w1 = jax.random.uniform(k1, (INPUT_SIZE, HIDDEN), jnp.float32, -lim1, lim1)
    b1 = jax.random.uniform(k2, (1, HIDDEN), jnp.float32, -lim1, lim1)
    w2 = jax.random.uniform(k3, (HIDDEN, OUT), jnp.float32, -lim2, lim2)
    b2 = jax.random.uniform(k4, (1, OUT), jnp.float32, -lim2, lim2)
    return w1, b1, w2, b2


def reference_forward(x, w1, b1, w2, b2):
    h = jnp.maximum(x @ w1 + b1, 0.0)
    return h @ w2 + b2


if __name__ == "__main__":
    key = jax.random.PRNGKey(0)
    kx, kp = jax.random.split(key)

    B = 8
    x = jax.random.normal(kx, (B, INPUT_SIZE), jnp.float32)
    w1, b1, w2, b2 = init_params(kp)

    ref = reference_forward(x, w1, b1, w2, b2)

    # Pure-f32 path: matches the reference within tight tolerance.
    out_f32 = jax.block_until_ready(
        encoder_forward(x, w1, b1, w2, b2, compute_dtype=None))
    assert out_f32.shape == (B, OUT)
    assert jnp.allclose(out_f32, ref, atol=1e-4, rtol=1e-4)

    # Default path: bf16 matmul operands, f32 accumulation (fast on all gens).
    out_bf16 = jax.block_until_ready(encoder_forward(x, w1, b1, w2, b2))
    assert out_bf16.shape == (B, OUT)
    assert jnp.allclose(out_bf16, ref, atol=5e-2, rtol=5e-2)

    print("KERNEL_OK")
</pallas_src>

<mosaic_0001>
module attributes {stable_mosaic.version = 11 : i64} {
  func.func @encoder_kernel(%arg0: i32, %arg1: memref<16x100xf32, #tpu.memory_space<vmem>>, %arg2: memref<100x256xf32, #tpu.memory_space<vmem>>, %arg3: memref<1x256xf32, #tpu.memory_space<vmem>>, %arg4: memref<256x20xf32, #tpu.memory_space<vmem>>, %arg5: memref<1x20xf32, #tpu.memory_space<vmem>>, %arg6: memref<16x20xf32, #tpu.memory_space<vmem>>) attributes {dimension_semantics = [#tpu.dimension_semantics<parallel>], iteration_bounds = array<i64: 1>, scalar_prefetch = 0 : i64, scratch_operands = 0 : i64, tpu.core_type = #tpu.core_type<tc>, window_params = [{transform_indices = @transform_0, window_bounds = array<i64: 16, 100>}, {pipeline_mode = #tpu.pipeline_mode<synchronous>, transform_indices = @transform_1, window_bounds = array<i64: 100, 256>}, {pipeline_mode = #tpu.pipeline_mode<synchronous>, transform_indices = @transform_2, window_bounds = array<i64: 1, 256>}, {pipeline_mode = #tpu.pipeline_mode<synchronous>, transform_indices = @transform_3, window_bounds = array<i64: 256, 20>}, {pipeline_mode = #tpu.pipeline_mode<synchronous>, transform_indices = @transform_4, window_bounds = array<i64: 1, 20>}, {transform_indices = @transform_5, window_bounds = array<i64: 16, 20>}]} {
    %c0 = arith.constant 0 : index
    %c0_0 = arith.constant 0 : index
    %0 = vector.load %arg3[%c0, %c0_0] : memref<1x256xf32, #tpu.memory_space<vmem>>, vector<1x256xf32>
    %c0_1 = arith.constant 0 : index
    %c0_2 = arith.constant 0 : index
    %1 = vector.load %arg5[%c0_1, %c0_2] : memref<1x20xf32, #tpu.memory_space<vmem>>, vector<1x20xf32>
    %c0_3 = arith.constant 0 : index
    %c0_4 = arith.constant 0 : index
    %2 = vector.load %arg1[%c0_3, %c0_4] : memref<16x100xf32, #tpu.memory_space<vmem>>, vector<16x100xf32>
    %c0_5 = arith.constant 0 : index
    %c0_6 = arith.constant 0 : index
    %3 = vector.load %arg2[%c0_5, %c0_6] : memref<100x256xf32, #tpu.memory_space<vmem>>, vector<100x256xf32>
    %cst = arith.constant dense<0.000000e+00> : vector<16x256xf32>
    %4 = tpu.matmul %2, %3, %cst {dimension_numbers = #tpu.dot_dimension_numbers<[1], [0], [0], [1], [0, 0, 1, 1], [], []>} : vector<16x100xf32>, vector<100x256xf32>, vector<16x256xf32> -> vector<16x256xf32>
    %5 = vector.broadcast %0 : vector<1x256xf32> to vector<16x256xf32>
    %6 = arith.addf %4, %5 : vector<16x256xf32>
    %cst_7 = arith.constant 0.000000e+00 : f32
    %7 = vector.broadcast %cst_7 : f32 to vector<16x256xf32>
    %8 = arith.maximumf %6, %7 : vector<16x256xf32>
    %c0_8 = arith.constant 0 : index
    %c0_9 = arith.constant 0 : index
    %9 = vector.load %arg4[%c0_8, %c0_9] : memref<256x20xf32, #tpu.memory_space<vmem>>, vector<256x20xf32>
    %cst_10 = arith.constant dense<0.000000e+00> : vector<16x20xf32>
    %10 = tpu.matmul %8, %9, %cst_10 {dimension_numbers = #tpu.dot_dimension_numbers<[1], [0], [0], [1], [0, 0, 1, 1], [], []>} : vector<16x256xf32>, vector<256x20xf32>, vector<16x20xf32> -> vector<16x20xf32>
    %11 = vector.broadcast %1 : vector<1x20xf32> to vector<16x20xf32>
    %12 = arith.addf %10, %11 : vector<16x20xf32>
    %c0_11 = arith.constant 0 : index
    %c0_12 = arith.constant 0 : index
    %13 = vector.load %arg6[%c0_11, %c0_12] : memref<16x20xf32, #tpu.memory_space<vmem>>, vector<16x20xf32>
    tpu.vector_store %arg6[%c0_11, %c0_12], %12 {strides = array<i32>} : memref<16x20xf32, #tpu.memory_space<vmem>>, vector<16x20xf32>,
    return
  }
  func.func @transform_0(%arg0: i32) -> (i32, i32) {
    %c0_i32 = arith.constant 0 : i32
    %c0_i32_0 = arith.constant 0 : i32
    return %arg0, %c0_i32 : i32, i32
  }
  func.func @transform_1(%arg0: i32) -> (i32, i32) {
    %c0_i32 = arith.constant 0 : i32
    %c0_i32_0 = arith.constant 0 : i32
    %c0_i32_1 = arith.constant 0 : i32
    return %c0_i32, %c0_i32_0 : i32, i32
  }
  func.func @transform_2(%arg0: i32) -> (i32, i32) {
    %c0_i32 = arith.constant 0 : i32
    %c0_i32_0 = arith.constant 0 : i32
    %c0_i32_1 = arith.constant 0 : i32
    return %c0_i32, %c0_i32_0 : i32, i32
  }
  func.func @transform_3(%arg0: i32) -> (i32, i32) {
    %c0_i32 = arith.constant 0 : i32
    %c0_i32_0 = arith.constant 0 : i32
    %c0_i32_1 = arith.constant 0 : i32
    return %c0_i32, %c0_i32_0 : i32, i32
  }
  func.func @transform_4(%arg0: i32) -> (i32, i32) {
    %c0_i32 = arith.constant 0 : i32
    %c0_i32_0 = arith.constant 0 : i32
    %c0_i32_1 = arith.constant 0 : i32
    return %c0_i32, %c0_i32_0 : i32, i32
  }
  func.func @transform_5(%arg0: i32) -> (i32, i32) {
    %c0_i32 = arith.constant 0 : i32
    %c0_i32_0 = arith.constant 0 : i32
    return %arg0, %c0_i32 : i32, i32
  }
}

</mosaic_0001>

<bundles_post_ra>
// kernel: tpu_custom_call.1
= control target key start
LH: loop header
LB: loop body
LE: loop exit
PB: predicated region body
PF: predicated region fallthrough
CT: control target
= control target key end

     0   :  { %10 = vsyncpa [#allocation3], 0  ;;  %vm69_vm0 = vcmask 1043456   ;;  %v358_v5 = vmov 0.0   ;;  %vm62_vm1 = vcmask 818176   ;;  %v52_v61 = vlaneseq  ;;  %s585_s0 = inlined_call_operand.vmem [shape: f32[8,100], index: 0, kind: input, shape index: {}]   ;;  %s586_s1 = inlined_call_operand.vmem [shape: f32[100,256], index: 1, kind: input, shape index: {}]   ;;  %s587_s2 = inlined_call_operand.vmem [shape: f32[1,256], index: 2, kind: input, shape index: {}]   ;;  %s588_s3 = inlined_call_operand.vmem [shape: f32[256,20], index: 3, kind: input, shape index: {}]   ;;  %s589_s4 = inlined_call_operand.vmem [shape: f32[1,20], index: 4, kind: input, shape index: {}]   ;;  %s590_s5 = inlined_call_operand.hbm [shape: f32[8,20], index: 5, kind: output, shape index: {}]  }
   0x1   :  { %v50_v0 = vld [vmem:[%s586_s1 + $0xc8] sm:$0xf]  ;;  %v48_v1 = vld [vmem:[%s586_s1 + $0xb8] sm:$0xff]  ;;  %v49_v2 = vld [vmem:[%s586_s1 + $0xc0] sm:$0xf]  ;;  %140 = vmatprep.mubr.f32.mxu0 %v358_v5  ;;  %vm270_vm2 = vcmask 162816  }
   0x2   :  { %289 = vmatprep.subr.msk.mxu0 %vm69_vm0, %v50_v0  ;;  %v47_v3 = vld [vmem:[%s586_s1 + $0xb0] sm:$0xff]  ;;  %v46_v4 = vld [vmem:[%s586_s1 + $0xa8] sm:$0xff]  ;;  %v45_v6 = vld [vmem:[%s586_s1 + $0xa0] sm:$0xff]  ;;  %v53_v62 = vshrl.u32 %v52_v61, 7 }
   0x3   :  { %290 = vmatpush1.msk.msra.mxu0 %vm69_vm0, %v49_v2  ;;  %v44_v7 = vld [vmem:[%s586_s1 + $0x98] sm:$0xff]  ;;  %v43_v8 = vld [vmem:[%s586_s1 + $0x90] sm:$0xff]  ;;  %v42_v9 = vld [vmem:[%s586_s1 + $0x88] sm:$0xff] }
   0x4   :  { %84 = vmatprep.subr.mxu0 %v48_v1  ;;  %v41_v10 = vld [vmem:[%s586_s1 + $0x80] sm:$0xff]  ;;  %v40_v11 = vld [vmem:[%s586_s1 + $0x78] sm:$0xff]  ;;  %v39_v12 = vld [vmem:[%s586_s1 + $0x70] sm:$0xff]  ;;  %v54_v63 = vsub.s32 0, %v53_v62  ;;  %v58_v1 = vsub.s32 1, %v53_v62 }
   0x5   :  { %85 = vmatpush1.msra.mxu0 %v47_v3  ;;  %v38_v13 = vld [vmem:[%s586_s1 + $0x68] sm:$0xff]  ;;  %v188_v14 = vld [vmem:[%s588_s3 + $0xf8] sm:$0xff]  ;;  %v187_v16 = vld [vmem:[%s588_s3 + $0xf0] sm:$0xff] }
   0x6   :  { %86 = vmatprep.subr.mxu0 %v46_v4  ;;  %294 = vmatprep.subr.mxu1 %v188_v14  ;;  %v172_v15 = vld [vmem:[%s588_s3 + $0x78] sm:$0xff]  ;;  %v171_v17 = vld [vmem:[%s588_s3 + $0x70] sm:$0xff]  ;;  %v37_v18 = vld [vmem:[%s586_s1 + $0x60] sm:$0xff] }
   0x7   :  { %87 = vmatpush1.msra.mxu0 %v45_v6  ;;  %295 = vmatpush3.msra.mxu1 %v172_v15  ;;  %v186_v19 = vld [vmem:[%s588_s3 + $0xe8] sm:$0xff]  ;;  %v36_v20 = vld [vmem:[%s586_s1 + $0x58] sm:$0xff]  ;;  %v35_v22 = vld [vmem:[%s586_s1 + $0x50] sm:$0xff] }
   0x8   :  { %88 = vmatprep.subr.mxu0 %v44_v7  ;;  %296 = vmatprep.subr.mxu1 %v187_v16  ;;  %v170_v21 = vld [vmem:[%s588_s3 + $0x68] sm:$0xff]  ;;  %v185_v23 = vld [vmem:[%s588_s3 + $0xe0] sm:$0xff]  ;;  %v184_v27 = vld [vmem:[%s588_s3 + $0xd8] sm:$0xff] }
   0x9   :  { %89 = vmatpush1.msra.mxu0 %v43_v8  ;;  %297 = vmatpush3.msra.mxu1 %v171_v17  ;;  %v34_v24 = vld [vmem:[%s586_s1 + $0x48] sm:$0xff]  ;;  %v169_v25 = vld [vmem:[%s588_s3 + $0x60] sm:$0xff]  ;;  %v32_v28 = vld [vmem:[%s586_s1 + $0x38] sm:$0xff] }
   0xa   :  { %90 = vmatprep.subr.mxu0 %v42_v9  ;;  %298 = vmatprep.subr.mxu1 %v186_v19  ;;  %v33_v26 = vld [vmem:[%s586_s1 + $0x40] sm:$0xff]  ;;  %v168_v29 = vld [vmem:[%s588_s3 + $0x58] sm:$0xff]  ;;  %v31_v30 = vld [vmem:[%s586_s1 + $0x30] sm:$0xff] }
   0xb   :  { %91 = vmatpush1.msra.mxu0 %v41_v10  ;;  %299 = vmatpush3.msra.mxu1 %v170_v21  ;;  %v183_v31 = vld [vmem:[%s588_s3 + $0xd0] sm:$0xff]  ;;  %v30_v32 = vld [vmem:[%s586_s1 + $0x28] sm:$0xff]  ;;  %v29_v34 = vld [vmem:[%s586_s1 + $0x20] sm:$0xff] }
   0xc   :  { %92 = vmatprep.subr.mxu0 %v40_v11  ;;  %300 = vmatprep.subr.mxu1 %v185_v23  ;;  %v167_v33 = vld [vmem:[%s588_s3 + $0x50] sm:$0xff]  ;;  %v182_v35 = vld [vmem:[%s588_s3 + $0xc8] sm:$0xff]  ;;  %v28_v36 = vld [vmem:[%s586_s1 + $0x18] sm:$0xff] }
   0xd   :  { %93 = vmatpush1.msra.mxu0 %v39_v12  ;;  %301 = vmatpush3.msra.mxu1 %v169_v25  ;;  %v166_v37 = vld [vmem:[%s588_s3 + $0x48] sm:$0xff]  ;;  %v27_v38 = vld [vmem:[%s586_s1 + $0x10] sm:$0xff]  ;;  %v181_v39 = vld [vmem:[%s588_s3 + $0xc0] sm:$0xff] }
   0xe   :  { %94 = vmatprep.subr.mxu0 %v38_v13  ;;  %302 = vmatprep.subr.mxu1 %v184_v27  ;;  %v26_v40 = vld [vmem:[%s586_s1 + $0x8] sm:$0xff]  ;;  %v165_v41 = vld [vmem:[%s588_s3 + $0x40] sm:$0xff]  ;;  %v180_v43 = vld [vmem:[%s588_s3 + $0xb8] sm:$0xff] }
   0xf   :  { %95 = vmatpush1.msra.mxu0 %v37_v18  ;;  %303 = vmatpush3.msra.mxu1 %v168_v29  ;;  %v25_v42 = vld [vmem:[%s586_s1] sm:$0xff]  ;;  %v164_v45 = vld [vmem:[%s588_s3 + $0x38] sm:$0xff]  ;;  %v179_v46 = vld [vmem:[%s588_s3 + $0xb0] sm:$0xff] }
  0x10   :  { %96 = vmatprep.subr.mxu0 %v36_v20  ;;  %304 = vmatprep.subr.mxu1 %v183_v31  ;;  %v23_v44 = vld [vmem:[%s585_s0] sm:$0xff]  ;;  %v163_v47 = vld [vmem:[%s588_s3 + $0x30] sm:$0xff]  ;;  %v178_v48 = vld [vmem:[%s588_s3 + $0xa8] sm:$0xff] }
  0x11   :  { %97 = vmatpush1.msra.mxu0 %v35_v22  ;;  %305 = vmatpush3.msra.mxu1 %v167_v33  ;;  %v24_v49 = vld [vmem:[%s585_s0 + $0x8] sm:$0xff]  ;;  %v177_v51 = vld [vmem:[%s588_s3 + $0xa0] sm:$0xff]  ;;  %v176_v53 = vld [vmem:[%s588_s3 + $0x98] sm:$0xff] }
  0x12   :  { %98 = vmatprep.subr.mxu0 %v34_v24  ;;  %306 = vmatprep.subr.mxu1 %v182_v35  ;;  %v162_v50 = vld [vmem:[%s588_s3 + $0x28] sm:$0xff]  ;;  %v161_v52 = vld [vmem:[%s588_s3 + $0x20] sm:$0xff]  ;;  %v160_v54 = vld [vmem:[%s588_s3 + $0x18] sm:$0xff] }
  0x13   :  { %99 = vmatpush1.msra.mxu0 %v33_v26  ;;  %307 = vmatpush3.msra.mxu1 %v166_v37  ;;  %v175_v55 = vld [vmem:[%s588_s3 + $0x90] sm:$0xff]  ;;  %v174_v57 = vld [vmem:[%s588_s3 + $0x88] sm:$0xff]  ;;  %v173_v59 = vld [vmem:[%s588_s3 + $0x80] sm:$0xff] }
  0x14   :  { %100 = vmatprep.subr.mxu0 %v32_v28  ;;  %308 = vmatprep.subr.mxu1 %v181_v39  ;;  %v159_v56 = vld [vmem:[%s588_s3 + $0x10] sm:$0xff]  ;;  %v158_v58 = vld [vmem:[%s588_s3 + $0x8] sm:$0xff]  ;;  %v157_v60 = vld [vmem:[%s588_s3] sm:$0xff] }
  0x15   :  { %101 = vmatpush1.msra.mxu0 %v31_v30  ;;  %309 = vmatpush3.msra.mxu1 %v165_v41  ;;  %v21_v0 = vld [vmem:[%s587_s2] sm:$0x3] }
  0x16   :  { %102 = vmatprep.subr.mxu0 %v30_v32  ;;  %310 = vmatprep.subr.mxu1 %v180_v43  ;;  %v55_v2 = vrot.slane %v21_v0, %v54_v63  ;;  %v59_v3 = vrot.slane %v21_v0, %v58_v1  ;;  %v293_v17 = vld [vmem:[%s589_s4] ss:$0 sm:$0xff] }
  0x17   :  { %103 = vmatpush1.msra.mxu0 %v29_v34  ;;  %311 = vmatpush3.msra.mxu1 %v164_v45 }
  0x18   :  { %104 = vmatprep.subr.mxu0 %v28_v36  ;;  %312 = vmatprep.subr.mxu1 %v179_v46 }
  0x19   :  { %105 = vmatpush1.msra.mxu0 %v27_v38  ;;  %313 = vmatpush3.msra.mxu1 %v163_v47 }
  0x1a   :  { %106 = vmatprep.subr.mxu0 %v26_v40  ;;  %314 = vmatprep.subr.mxu1 %v178_v48 }
  0x1b   :  { %107 = vmatpush1.msra.mxu0 %v25_v42  ;;  %315 = vmatpush3.msra.mxu1 %v162_v50 }
  0x1c   :  { %291 = vmatmul.mubr.msk.f32.vlgmr.msra.gmra.mxu0 %vm62_vm1, %v23_v44  ;;  %316 = vmatprep.subr.mxu1 %v177_v51 }
  0x1d   :  { %146 = vmatprep.mubr.f32.mxu0 %v358_v5  ;;  %317 = vmatpush3.msra.mxu1 %v161_v52 }
  0x1e   :  { %318 = vmatprep.subr.mxu1 %v176_v53 }
  0x1f   :  { %319 = vmatpush3.msra.mxu1 %v160_v54 }
  0x20   :  { %292 = vmatmul.mubr.msk.f32.gmra.mxu0 %vm62_vm1, %v24_v49  ;;  %320 = vmatprep.subr.mxu1 %v175_v55 }
  0x21   :  { %321 = vmatpush3.msra.mxu1 %v159_v56 }
  0x22   :  { %322 = vmatprep.subr.mxu1 %v174_v57 }
  0x23   :  { %323 = vmatpush3.msra.mxu1 %v158_v58 }
  0x24   :  { %324 = vmatprep.subr.mxu1 %v173_v59 }
  0x25   :  { %325 = vmatpush3.msra.mxu1 %v157_v60 }
  0xdc   :  { %v142_v4 = vpop.f32.mrf.mxu0 }
  0xdd   :  { %v143_v5 = vadd.f32 %v142_v4, %v55_v2 }
  0xde   :  { %v144_v6 = vpop.f32.mrf.mxu0 }
  0xdf   :  { %v145_v7 = vadd.f32 %v144_v6, %v59_v3  ;;  %v153_v10 = vmax.f32 %v143_v5, 0.0 }
  0xe0   :  { %v148_v8 = vpop.f32.mrf.mxu0 }
  0xe1   :  { %v154_v9 = vmax.f32 %v145_v7, 0.0  ;;  %v149_v11 = vadd.f32 %v148_v8, %v55_v2 }
  0xe2   :  { %v150_v12 = vpop.f32.mrf.mxu0 }
  0xe3   :  { %v151_v13 = vadd.f32 %v150_v12, %v59_v3  ;;  %259 = vmatprep.mubr.f32.mxu1 %v154_v9  ;;  %v155_v15 = vmax.f32 %v149_v11, 0.0 }
  0xe4   :  { %260 = vmatmul.mubr.f32.vlgmr.msra.gmra.mxu1 %v153_v10 }
  0xe5   :  { %v156_v14 = vmax.f32 %v151_v13, 0.0 }
  0xe7   :  { %264 = vmatprep.mubr.f32.mxu1 %v156_v14 }
  0xe8   :  { %265 = vmatmul.mubr.f32.gmra.mxu1 %v155_v15 }
 0x1a4   :  { %v326_v16 = vpop.f32.mrf.mxu1 }
 0x1a6   :  { %v327_v18 = vpop.f32.mrf.mxu1 }
 0x1a7   :  { %v328_v19 = vadd.f32 %v327_v18, %v326_v16 }
 0x1a8   :  { %v329_v20 = vpop.f32.mrf.mxu1 }
 0x1a9   :  { %v262_v21 = vadd.f32 %v328_v19, %v293_v17 }
 0x1aa   :  { %v330_v22 = vpop.f32.mrf.mxu1 }
 0x1ab   :  { %271 = vst.msk [vmem:[#allocation2] sm:$0xff] %vm270_vm2, %v262_v21  ;;  %v331_v23 = vadd.f32 %v330_v22, %v329_v20 }
 0x1ad   :  { %v267_v24 = vadd.f32 %v331_v23, %v293_v17 }
 0x1af   :  { %272 = vst.msk [vmem:[#allocation2 + $0x8] sm:$0xff] %vm270_vm2, %v267_v24 }
 0x1b0   :  { %277 = vsyncadd [#allocation3], 128  ;;  %s359_s12 = smov [#allocation2]  }
 0x1b1   :  { %s278_s13 = sshll.u32 %s359_s12, 4  ;;  %s279_s13 = int_to_ptr.vmem [resolvable:$true] %s278_s13 }
 0x1b2   :  { %s336_s14 = scalar_lea.vmem %s279_s13, 128  ;;  %s340_s15 = scalar_lea.vmem %s279_s13, 256 }
 0x1b3   :  { %p337_p0 = scmp.ne.s32.totalorder %s279_s13, %s336_s14  ;;  %p341_p1 = scmp.lt.s32.totalorder %s279_s13, %s279_s13 }
 0x1b4   :  { %p342_p2 = scmp.lt.s32.totalorder %s340_s15, %s336_s14 }
 0x1b6   :  { %p343_p3 = por %p342_p2, %p341_p1 }
 0x1b8   :  { %p344_p4 = pnand %p343_p3, %p337_p0 }
 0x1ba   :  { %347 = shalt.err (!%p344_p4)
}
 0x1bb   :  { %s360_s4 = smov 128   ;;  %s361_s16 = smov 8  }
 0x1bc   :  { %284 = dma.vmem_to_hbm [thread:$0]  %s279_s13, 128, %s590_s5, [#allocation3], %s360_s4, %s360_s4, %s361_s16  }
 0x1bd   :  { %356 = dma.done.wait [#allocation3], 256  }
 0x1be   :  { %357 = vsyncadd [#allocation3], 4294967040 }
 0x1bf   :  { %288 = vsyncpa [#allocation3], 1 }

</bundles_post_ra>
